<compile_context>
chip_gen: v6e
topology: v6e:2x2x1
jax: 0.10.0
libtpu: 0.0.40
codegen_flags: <defaults>
</compile_context>

<pallas_src>
import functools
import math

import jax
import jax.numpy as jnp
from jax.experimental import pallas as pl
from jax.experimental.pallas import tpu as pltpu


def _segemb_kernel(ids_ref, base_ref, delta_ref, out_ref, *, vocab_size):
    """One output tile of the segment-embedding gather, pure VPU.

    ids_ref:   (tr, F)            int32  -- F token ids folded per output row
    base_ref:  (1, W)             f32    -- emb[0] tiled across the F folds
    delta_ref: (max(V-1,1), F, W) f32    -- delta[v-1, f, f*D:(f+1)*D] =
                                            emb[v] - emb[0], zeros elsewhere
    out_ref:   (tr, W)            float  -- lane-dense output rows (W = F*D)
    """
    ids = ids_ref[...]                                       # (tr, F) int32
    base = base_ref[...]                                     # (1, W) f32
    acc = jnp.broadcast_to(base, out_ref.shape)              # start at emb[0]
    n_fold = ids_ref.shape[1]
    if vocab_size > 1:
        delta = delta_ref[...]                               # (V-1, F, W) f32
        for v in range(1, vocab_size):                       # tiny static loop
            for f in range(n_fold):
                # Narrow (tr, 1) compare + cast; mask lane-broadcast is XLU.
                m = (ids[:, f:f + 1] == v).astype(jnp.float32)
                acc = acc + m * delta[v - 1, f][None, :]     # (tr, W) FMA
    out_ref[...] = acc.astype(out_ref.dtype)


def _pick_row_tile(n_rows, max_rows):
    """Row tile <= max_rows: full array if it fits, else a large mult-of-8
    (preferring an exact divisor near max_rows to avoid a ragged edge tile)."""
    if n_rows <= max_rows:
        return n_rows
    tr = max(8, max_rows - (max_rows % 8))
    for cand in range(tr, max(tr - 64 * 8, 7), -8):
        if n_rows % cand == 0:
            return cand
    return tr  # ragged last tile; Pallas masks the edge writeback


def seg_emb(token_type_ids, emb_table, *, row_tile=None,
            tile_budget_bytes=4 * 1024 * 1024):
    """token_type_ids: (...,) int; emb_table: (V, D) -> (..., D)."""
    orig_shape = token_type_ids.shape
    V, D = emb_table.shape
    N = math.prod(orig_shape)
    dt = emb_table.dtype
    itemsize = jnp.dtype(dt).itemsize

    # Fold F tokens per output row so the output's last dim is lane-dense.
    if D < 128 and 128 % D == 0:
        F = 128 // D
    else:
        F = 1
    W = F * D

    # Flatten ids; pad token count up to a multiple of F (pad rows -> emb[0],
    # sliced away afterwards; no padding in the common BERT shapes).
    ids_flat = token_type_ids.reshape(-1).astype(jnp.int32)
    n_pad = (-N) % F
    if n_pad:
        ids_flat = jnp.concatenate(
            [ids_flat, jnp.zeros((n_pad,), jnp.int32)])
    n_tok = N + n_pad
    R = n_tok // F
    ids = ids_flat.reshape(R, F)

    # Tiny precomputed tables (a few KiB at most), in f32 for exactness.
    emb_f32 = emb_table.astype(jnp.float32)
    base = jnp.tile(emb_f32[0], F).reshape(1, W)
    if V > 1:
        d_vf = emb_f32[1:] - emb_f32[0:1]                     # (V-1, D)
        eye_f = jnp.eye(F, dtype=jnp.float32)                 # (F, F)
        delta = jnp.einsum('fg,vd->vfgd', eye_f, d_vf).reshape(V - 1, F, W)
    else:
        delta = jnp.zeros((1, F, W), jnp.float32)
    nd = delta.shape[0]

    # Row tile: as large as the VMEM budget allows (double-buffered output).
    max_rows = max(8, (tile_budget_bytes // max(W * itemsize, 1)) // 8 * 8)
    if row_tile is not None:
        max_rows = max(1, int(row_tile))
    tr = _pick_row_tile(R, max_rows)
    grid = (pl.cdiv(R, tr),)

    kernel = functools.partial(_segemb_kernel, vocab_size=V)

    cost = pl.CostEstimate(
        flops=2 * n_tok * D * max(V - 1, 1),
        transcendentals=0,
        bytes_accessed=int(n_tok * D * itemsize + n_tok * 4
                           + (nd * F + 1) * W * 4),
    )

    out = pl.pallas_call(
        kernel,
        out_shape=jax.ShapeDtypeStruct((R, W), dt),
        grid_spec=pltpu.PrefetchScalarGridSpec(
            num_scalar_prefetch=0,
            grid=grid,
            in_specs=[
                pl.BlockSpec((tr, F), lambda i: (i, 0)),        # token ids
                pl.BlockSpec((1, W), lambda i: (0, 0)),         # emb[0] tiled
                pl.BlockSpec((nd, F, W), lambda i: (0, 0, 0)),  # deltas
            ],
            out_specs=pl.BlockSpec((tr, W), lambda i: (i, 0)),
        ),
        compiler_params=pltpu.CompilerParams(
            dimension_semantics=("parallel",)),
        cost_estimate=cost,
    )(ids, base, delta)

    # (R, F*D) -> (n_tok, D): pure row-major reshape, no data movement.
    out = out.reshape(n_tok, D)
    if n_pad:
        out = out[:N]
    return out.reshape(*orig_shape, D)


if __name__ == "__main__":
    key = jax.random.PRNGKey(0)

    def _check(vocab_size, d_model, B, S, key):
        k_emb, k_ids = jax.random.split(key)
        # nn.Embedding default init ~ N(0, 1)
        emb_table = jax.random.normal(
            k_emb, (vocab_size, d_model), dtype=jnp.float32)
        token_type_ids = jax.random.randint(
            k_ids, (B, S), 0, vocab_size, dtype=jnp.int32)
        out = jax.block_until_ready(seg_emb(token_type_ids, emb_table))
        ref = jnp.take(emb_table, token_type_ids, axis=0)
        assert out.shape == (B, S, d_model)
        assert jnp.allclose(out, ref, atol=1e-6), "mismatch vs reference"

    k1, k2, k3 = jax.random.split(key, 3)
    _check(vocab_size=2, d_model=32, B=2, S=8, key=k1)    # fold path (D < 128)
    _check(vocab_size=2, d_model=256, B=2, S=8, key=k2)   # no-fold path
    _check(vocab_size=3, d_model=32, B=2, S=9, key=k3)    # padded / ragged

    print("KERNEL_OK")
</pallas_src>

<mosaic_0001>
module attributes {stable_mosaic.version = 11 : i64} {
  func.func @_segemb_kernel(%arg0: i32, %arg1: memref<4x4xi32, #tpu.memory_space<vmem>>, %arg2: memref<1x128xf32, #tpu.memory_space<vmem>>, %arg3: memref<1x4x128xf32, #tpu.memory_space<vmem>>, %arg4: memref<4x128xf32, #tpu.memory_space<vmem>>) attributes {dimension_semantics = [#tpu.dimension_semantics<parallel>], iteration_bounds = array<i64: 1>, scalar_prefetch = 0 : i64, scratch_operands = 0 : i64, tpu.core_type = #tpu.core_type<tc>, window_params = [{transform_indices = @transform_0, window_bounds = array<i64: 4, 4>}, {pipeline_mode = #tpu.pipeline_mode<synchronous>, transform_indices = @transform_1, window_bounds = array<i64: 1, 128>}, {pipeline_mode = #tpu.pipeline_mode<synchronous>, transform_indices = @transform_2, window_bounds = array<i64: 1, 4, 128>}, {transform_indices = @transform_3, window_bounds = array<i64: 4, 128>}]} {
    %c0 = arith.constant 0 : index
    %c0_0 = arith.constant 0 : index
    %0 = vector.load %arg1[%c0, %c0_0] : memref<4x4xi32, #tpu.memory_space<vmem>>, vector<4x4xi32>
    %c0_1 = arith.constant 0 : index
    %c0_2 = arith.constant 0 : index
    %1 = vector.load %arg2[%c0_1, %c0_2] : memref<1x128xf32, #tpu.memory_space<vmem>>, vector<1x128xf32>
    %2 = vector.shape_cast %1 : vector<1x128xf32> to vector<1x128xf32>
    %3 = vector.broadcast %2 : vector<1x128xf32> to vector<4x128xf32>
    %c0_3 = arith.constant 0 : index
    %c0_4 = arith.constant 0 : index
    %c0_5 = arith.constant 0 : index
    %4 = vector.load %arg3[%c0_3, %c0_4, %c0_5] : memref<1x4x128xf32, #tpu.memory_space<vmem>>, vector<1x4x128xf32>
    %5 = vector.extract_strided_slice %0 {offsets = [0, 0], sizes = [4, 1], strides = [1, 1]} : vector<4x4xi32> to vector<4x1xi32>
    %c1_i32 = arith.constant 1 : i32
    %6 = vector.broadcast %c1_i32 : i32 to vector<4x1xi32>
    %7 = arith.cmpi eq, %5, %6 : vector<4x1xi32>
    %8 = arith.extui %7 : vector<4x1xi1> to vector<4x1xi32>
    %9 = arith.sitofp %8 : vector<4x1xi32> to vector<4x1xf32>
    %10 = vector.extract_strided_slice %4 {offsets = [0, 0, 0], sizes = [1, 1, 128], strides = [1, 1, 1]} : vector<1x4x128xf32> to vector<1x1x128xf32>
    %11 = vector.shape_cast %10 : vector<1x1x128xf32> to vector<128xf32>
    %12 = vector.shape_cast %11 : vector<128xf32> to vector<1x128xf32>
    %13 = vector.broadcast %9 : vector<4x1xf32> to vector<4x128xf32>
    %14 = vector.broadcast %12 : vector<1x128xf32> to vector<4x128xf32>
    %15 = arith.mulf %13, %14 : vector<4x128xf32>
    %16 = arith.addf %3, %15 : vector<4x128xf32>
    %17 = vector.extract_strided_slice %0 {offsets = [0, 1], sizes = [4, 1], strides = [1, 1]} : vector<4x4xi32> to vector<4x1xi32>
    %c1_i32_6 = arith.constant 1 : i32
    %18 = vector.broadcast %c1_i32_6 : i32 to vector<4x1xi32>
    %19 = arith.cmpi eq, %17, %18 : vector<4x1xi32>
    %20 = arith.extui %19 : vector<4x1xi1> to vector<4x1xi32>
    %21 = arith.sitofp %20 : vector<4x1xi32> to vector<4x1xf32>
    %22 = vector.extract_strided_slice %4 {offsets = [0, 1, 0], sizes = [1, 1, 128], strides = [1, 1, 1]} : vector<1x4x128xf32> to vector<1x1x128xf32>
    %23 = vector.shape_cast %22 : vector<1x1x128xf32> to vector<128xf32>
    %24 = vector.shape_cast %23 : vector<128xf32> to vector<1x128xf32>
    %25 = vector.broadcast %21 : vector<4x1xf32> to vector<4x128xf32>
    %26 = vector.broadcast %24 : vector<1x128xf32> to vector<4x128xf32>
    %27 = arith.mulf %25, %26 : vector<4x128xf32>
    %28 = arith.addf %16, %27 : vector<4x128xf32>
    %29 = vector.extract_strided_slice %0 {offsets = [0, 2], sizes = [4, 1], strides = [1, 1]} : vector<4x4xi32> to vector<4x1xi32>
    %c1_i32_7 = arith.constant 1 : i32
    %30 = vector.broadcast %c1_i32_7 : i32 to vector<4x1xi32>
    %31 = arith.cmpi eq, %29, %30 : vector<4x1xi32>
    %32 = arith.extui %31 : vector<4x1xi1> to vector<4x1xi32>
    %33 = arith.sitofp %32 : vector<4x1xi32> to vector<4x1xf32>
    %34 = vector.extract_strided_slice %4 {offsets = [0, 2, 0], sizes = [1, 1, 128], strides = [1, 1, 1]} : vector<1x4x128xf32> to vector<1x1x128xf32>
    %35 = vector.shape_cast %34 : vector<1x1x128xf32> to vector<128xf32>
    %36 = vector.shape_cast %35 : vector<128xf32> to vector<1x128xf32>
    %37 = vector.broadcast %33 : vector<4x1xf32> to vector<4x128xf32>
    %38 = vector.broadcast %36 : vector<1x128xf32> to vector<4x128xf32>
    %39 = arith.mulf %37, %38 : vector<4x128xf32>
    %40 = arith.addf %28, %39 : vector<4x128xf32>
    %41 = vector.extract_strided_slice %0 {offsets = [0, 3], sizes = [4, 1], strides = [1, 1]} : vector<4x4xi32> to vector<4x1xi32>
    %c1_i32_8 = arith.constant 1 : i32
    %42 = vector.broadcast %c1_i32_8 : i32 to vector<4x1xi32>
    %43 = arith.cmpi eq, %41, %42 : vector<4x1xi32>
    %44 = arith.extui %43 : vector<4x1xi1> to vector<4x1xi32>
    %45 = arith.sitofp %44 : vector<4x1xi32> to vector<4x1xf32>
    %46 = vector.extract_strided_slice %4 {offsets = [0, 3, 0], sizes = [1, 1, 128], strides = [1, 1, 1]} : vector<1x4x128xf32> to vector<1x1x128xf32>
    %47 = vector.shape_cast %46 : vector<1x1x128xf32> to vector<128xf32>
    %48 = vector.shape_cast %47 : vector<128xf32> to vector<1x128xf32>
    %49 = vector.broadcast %45 : vector<4x1xf32> to vector<4x128xf32>
    %50 = vector.broadcast %48 : vector<1x128xf32> to vector<4x128xf32>
    %51 = arith.mulf %49, %50 : vector<4x128xf32>
    %52 = arith.addf %40, %51 : vector<4x128xf32>
    %c0_9 = arith.constant 0 : index
    %c0_10 = arith.constant 0 : index
    %53 = vector.load %arg4[%c0_9, %c0_10] : memref<4x128xf32, #tpu.memory_space<vmem>>, vector<4x128xf32>
    tpu.vector_store %arg4[%c0_9, %c0_10], %52 {strides = array<i32>} : memref<4x128xf32, #tpu.memory_space<vmem>>, vector<4x128xf32>,
    return
  }
  func.func @transform_0(%arg0: i32) -> (i32, i32) {
    %c0_i32 = arith.constant 0 : i32
    %c0_i32_0 = arith.constant 0 : i32
    return %arg0, %c0_i32 : i32, i32
  }
  func.func @transform_1(%arg0: i32) -> (i32, i32) {
    %c0_i32 = arith.constant 0 : i32
    %c0_i32_0 = arith.constant 0 : i32
    %c0_i32_1 = arith.constant 0 : i32
    return %c0_i32, %c0_i32_0 : i32, i32
  }
  func.func @transform_2(%arg0: i32) -> (i32, i32, i32) {
    %c0_i32 = arith.constant 0 : i32
    %c0_i32_0 = arith.constant 0 : i32
    %c0_i32_1 = arith.constant 0 : i32
    %c0_i32_2 = arith.constant 0 : i32
    return %c0_i32, %c0_i32_0, %c0_i32_1 : i32, i32, i32
  }
  func.func @transform_3(%arg0: i32) -> (i32, i32) {
    %c0_i32 = arith.constant 0 : i32
    %c0_i32_0 = arith.constant 0 : i32
    return %arg0, %c0_i32 : i32, i32
  }
}

</mosaic_0001>

<bundles_post_ra>
// kernel: tpu_custom_call.1
= control target key start
LH: loop header
LB: loop body
LE: loop exit
PB: predicated region body
PF: predicated region fallthrough
CT: control target
= control target key end

     0   :  { %8 = vsyncpa [#allocation3], 0  ;;  %s230_s0 = inlined_call_operand.hbm [shape: s32[4,4], index: 0, kind: input, shape index: {}]   ;;  %s231_s1 = inlined_call_operand.vmem [shape: f32[1,128], index: 1, kind: input, shape index: {}]   ;;  %s232_s2 = inlined_call_operand.hbm [shape: f32[1,4,128], index: 2, kind: input, shape index: {}]   ;;  %s233_s3 = inlined_call_operand.hbm [shape: f32[4,128], index: 3, kind: output, shape index: {}]  }
   0x1   :  { %9 = vsyncpa [#allocation6], 0 }
   0x2   :  { %10 = vsyncpa [#allocation4], 0  ;;  %s190_s12 = smov [#allocation2]   ;;  %s191_s14 = smov [#allocation5]  }
   0x3   :  { %s17_s13 = sshll.u32 %s190_s12, 4  ;;  %s29_s15 = sshll.u32 %s191_s14, 4  ;;  %s18_s13 = int_to_ptr.vmem [resolvable:$true] %s17_s13  ;;  %s30_s15 = int_to_ptr.vmem [resolvable:$true] %s29_s15 }
   0x4   :  { %s132_s16 = scalar_lea.vmem %s18_s13, 64  ;;  %p137_p1 = scmp.lt.s32.totalorder %s18_s13, %s18_s13 }
   0x5   :  { %p133_p0 = scmp.ne.s32.totalorder %s18_s13, %s132_s16  ;;  %p138_p2 = scmp.lt.s32.totalorder %s132_s16, %s132_s16 }
   0x7   :  { %p139_p3 = por %p138_p2, %p137_p1 }
   0x9   :  { %p140_p4 = pnand %p139_p3, %p133_p0 }
   0xb   :  { %143 = shalt.err (!%p140_p4)
}
   0xc   :  { %20 = dma.hbm_to_vmem [thread:$0]  %s230_s0, 64, %s18_s13, [#allocation3]  }
   0xd   :  { %s152_s19 = scalar_lea.vmem %s30_s15, 64  ;;  %p157_p6 = scmp.lt.s32.totalorder %s30_s15, %s30_s15 }
   0xe   :  { %p153_p5 = scmp.ne.s32.totalorder %s30_s15, %s152_s19  ;;  %p158_p7 = scmp.lt.s32.totalorder %s152_s19, %s152_s19 }
  0x10   :  { %p159_p8 = por %p158_p7, %p157_p6 }
  0x12   :  { %p160_p9 = pnand %p159_p8, %p153_p5 }
  0x14   :  { %163 = shalt.err (!%p160_p9)
}
  0x15   :  { %32 = dma.hbm_to_vmem [thread:$0]  %s232_s2, 64, %s30_s15, [#allocation6]  }
  0x16   :  { %184 = dma.done.wait [#allocation3], 64  }
  0x17   :  { %185 = vsyncadd [#allocation3], 4294967232 }
  0x18   :  { %186 = dma.done.wait [#allocation6], 64  }
  0x19   :  { %187 = vsyncadd [#allocation6], 4294967232  ;;  %v192_v0 = vmov 0   ;;  %v193_v1 = vmov 2   ;;  %v39_v2 = vld [vmem:[#allocation2] sm:$0xf]  ;;  %v56_v7 = vlaneseq }
  0x1a   :  { %119 = vset.pattern.permute.xlu0 %v192_v0  ;;  %121 = vset.pattern.permute.xlu1 %v193_v1  ;;  %vm48_vm0 = vcmp.eq.s32.totalorder %v39_v2, 1  ;;  %v194_v3 = vmov 0.0   ;;  %v195_v5 = vmov 1   ;;  %v196_v6 = vmov 3   ;;  %v47_v10 = vld [vmem:[#allocation5] sm:$0xf] }
  0x1b   :  { %v110_v4 = vsel %vm48_vm0, 1.0, %v194_v3  ;;  %v57_v8 = vshrl.u32 %v56_v7, 7  ;;  %v109_v19 = vld [vmem:[%s231_s1] ss:$0 sm:$0xff]  ;;  %s197_s22 = smov [#allocation7]  }
  0x1c   :  { %53 = vperm.xlu0 %119, %v110_v4   ;;  %73 = vperm.xlu1 %121, %v110_v4   ;;  %s99_s23 = sshll.u32 %s197_s22, 4  ;;  %s100_s23 = int_to_ptr.vmem [resolvable:$true] %s99_s23 }
  0x1d   :  { %v58_v9 = vsub.s32 0, %v57_v8  ;;  %v68_v12 = vsub.s32 1, %v57_v8  ;;  %v78_v14 = vsub.s32 2, %v57_v8  ;;  %v88_v16 = vsub.s32 3, %v57_v8  ;;  %s164_s24 = scalar_lea.vmem %s100_s23, 64  ;;  %p169_p11 = scmp.lt.s32.totalorder %s100_s23, %s100_s23 }
  0x1e   :  { %p165_p10 = scmp.ne.s32.totalorder %s100_s23, %s164_s24  ;;  %p170_p12 = scmp.lt.s32.totalorder %s164_s24, %s164_s24 }
  0x1f   :  { %v59_v11 = vrot.slane %v47_v10, %v58_v9  ;;  %v69_v18 = vrot.slane %v47_v10, %v68_v12  ;;  %v79_v20 = vrot.slane %v47_v10, %v78_v14  ;;  %v89_v21 = vrot.slane %v47_v10, %v88_v16 }
  0x20   :  { %120 = vset.pattern.permute.xlu0 %v195_v5  ;;  %122 = vset.pattern.permute.xlu1 %v196_v6  ;;  %p171_p13 = por %p170_p12, %p169_p11 }
  0x21   :  { %63 = vperm.xlu0 %120, %v110_v4   ;;  %83 = vperm.xlu1 %122, %v110_v4  }
  0x22   :  { %p172_p0 = pnand %p171_p13, %p165_p10 }
  0x25   :  { %123 = vset.pattern.permute.xlu0 %v196_v6 }
  0x97   :  { %v54_v13 = vpop.permute.xlu0 %53  ;;  %v74_v15 = vpop.permute.xlu1 %73 }
  0x98   :  { %v60_v17 = vmul.f32 %v59_v11, %v54_v13  ;;  %v80_v26 = vmul.f32 %v79_v20, %v74_v15 }
  0x9a   :  { %v61_v24 = vadd.f32 %v109_v19, %v60_v17 }
  0x9c   :  { %v64_v22 = vpop.permute.xlu0 %63  ;;  %v84_v23 = vpop.permute.xlu1 %83 }
  0x9d   :  { %v70_v25 = vmul.f32 %v69_v18, %v64_v22  ;;  %v90_v28 = vmul.f32 %v89_v21, %v84_v23 }
  0x9f   :  { %v71_v27 = vadd.f32 %v70_v25, %v61_v24 }
  0xa1   :  { %v81_v29 = vadd.f32 %v80_v26, %v71_v27 }
  0xa3   :  { %v91_v30 = vadd.f32 %v90_v28, %v81_v29 }
  0xa5   :  { %92 = vst [vmem:[#allocation7] sm:$0xf] %v91_v30 }
  0xa6   :  { %175 = shalt.err (!%p172_p0)
}
  0xa7   :  { %102 = dma.vmem_to_hbm [thread:$0]  %s100_s23, 64, %s233_s3, [#allocation4]  }
  0xa8   :  { %188 = dma.done.wait [#allocation4], 64  }
  0xa9   :  { %189 = vsyncadd [#allocation4], 4294967232 }
  0xaa   :  { %106 = vsyncpa [#allocation3], 1 }
  0xab   :  { %107 = vsyncpa [#allocation6], 1 }
  0xac   :  { %108 = vsyncpa [#allocation4], 1 }

</bundles_post_ra>
